<compile_context>
chip_gen: v7x
topology: tpu7x:2x2x1
jax: 0.10.0
libtpu: 0.0.40
codegen_flags: <defaults>
</compile_context>

<pallas_src>
import functools

import jax
import jax.numpy as jnp
from jax.experimental import pallas as pl
from jax.experimental.pallas import tpu as pltpu


# ----------------------------------------------------------------------------
# Filter construction (mirrors Willmore_Adaptation.build_kernels, forced f32)
# ----------------------------------------------------------------------------
def build_willmore_kernel(init_a_vals, K):
    """Returns the (F, K) per-band filter, time-flipped like torch."""
    assert K >= 2, "Willmore_Adaptation needs kernel_size >= 2"
    a = init_a_vals.astype(jnp.float32)                       # (F,)
    r = jnp.arange(0, K - 1, dtype=jnp.float32)               # (K-1,)
    a_pow = a[:, None] ** r[None, :]                          # (F, K-1): a^0..a^(K-2)
    C = 1.0 / jnp.sum(a_pow, axis=1)                          # (F,)
    tail = -C[:, None] * a_pow                                # (F, K-1)
    kern = jnp.concatenate(
        [jnp.ones((a.shape[0], 1), jnp.float32), tail], axis=1)   # (F, K)
    return kern[:, ::-1]                                      # torch.flip(dims=(2,))


# ----------------------------------------------------------------------------
# Pallas kernel: per-frequency temporal correlation + abs, tiled along time
# ----------------------------------------------------------------------------
def _willmore_kernel(x_ref, w_ref, o_ref, carry_ref, *, K, TT):
    # x_ref    : (F, TT)   current time tile (batch/channel dims squeezed)
    # w_ref    : (F, K)    w[:, j] multiplies x[t - j]
    # o_ref    : (F, TT)   |filtered| output tile
    # carry_ref: (F, K-1)  trailing columns of the previous time tile
    t = pl.program_id(1)

    x = x_ref[...]
    if x.dtype != jnp.float32:
        x = x.astype(jnp.float32)
    w = w_ref[...]

    # First time tile of a batch row: replicate padding -> history is x[:, 0].
    @pl.when(t == 0)
    def _():
        carry_ref[...] = jnp.broadcast_to(x[:, 0:1], carry_ref.shape)

    carry = carry_ref[...]                                    # (F, K-1) f32
    lane = jax.lax.broadcasted_iota(jnp.int32, x.shape, 1)    # (F, TT)

    # out[t] = sum_j w[:, j] * x[t - j]   (history from carry / replicate)
    acc = x * w[:, 0:1]
    rolled = x
    for j in range(1, K):                                     # K is tiny; unrolled
        rolled = pltpu.roll(x, j, axis=1)                     # lanes >= j: x[:, t-j]
        shifted = rolled
        for i in range(j):                                    # lanes < j from carry
            shifted = jnp.where(lane == i,
                                carry[:, K - 1 - j + i:K - j + i], shifted)
        acc = acc + shifted * w[:, j:j + 1]

    out = jnp.abs(acc)
    if out.dtype != o_ref.dtype:
        out = out.astype(o_ref.dtype)
    o_ref[...] = out

    # rolled == roll(x, K-1): lanes 0..K-2 hold x[:, TT-(K-1) .. TT-1]
    carry_ref[...] = rolled[:, 0:K - 1]


def _choose_time_tile(T, max_tile=1024):
    if T <= max_tile:
        return T                                   # full time axis in one block
    for tt in range(max_tile, 127, -128):          # prefer a lane-aligned divisor
        if T % tt == 0:
            return tt
    return max_tile                                # masked edge block fallback


def willmore_forward(spectro_in, init_a_vals, kernel_size=2, *, time_tile=None):
    """spectro_in: (B, 1, F, T) -> (B, 1, F, T)."""
    B, C, F, T = spectro_in.shape
    assert C == 1, "Willmore_Adaptation expects a 1-channel spectrogram"
    K = kernel_size
    assert K >= 2

    kern = build_willmore_kernel(init_a_vals, K)   # (F, K) torch-style (flipped)
    w = kern[:, ::-1]                              # w[:, j] multiplies x[t - j]

    TT = _choose_time_tile(T) if time_tile is None else time_tile
    assert TT == T or TT % 128 == 0, "time tile must be lane aligned or the full axis"
    assert TT >= K
    NT = pl.cdiv(T, TT)

    kernel_fn = functools.partial(_willmore_kernel, K=K, TT=TT)

    out = pl.pallas_call(
        kernel_fn,
        out_shape=jax.ShapeDtypeStruct((B, 1, F, T), spectro_in.dtype),
        grid_spec=pltpu.PrefetchScalarGridSpec(
            num_scalar_prefetch=0,
            grid=(B, NT),
            in_specs=[
                # raw input tiles, no HBM-side pad/squeeze copies
                pl.BlockSpec((None, None, F, TT), lambda b, t: (b, 0, 0, t)),
                # filter weights: constant index_map -> stays resident in VMEM
                pl.BlockSpec((F, K), lambda b, t: (0, 0)),
            ],
            out_specs=pl.BlockSpec((None, None, F, TT), lambda b, t: (b, 0, 0, t)),
            scratch_shapes=[pltpu.VMEM((F, K - 1), jnp.float32)],
        ),
        compiler_params=pltpu.CompilerParams(
            dimension_semantics=("parallel", "arbitrary"),
            vmem_limit_bytes=48 * 1024 * 1024,
        ),
    )(spectro_in, w)
    return out


# ----------------------------------------------------------------------------
# Pure-JAX reference (explicit replicate pad + correlation + abs)
# ----------------------------------------------------------------------------
def willmore_reference(spectro_in, init_a_vals, kernel_size=2):
    K = kernel_size
    x = spectro_in[:, 0].astype(jnp.float32)                  # (B, F, T)
    T = x.shape[-1]
    kern = build_willmore_kernel(init_a_vals, K)              # (F, K)
    xp = jnp.pad(x, ((0, 0), (0, 0), (K - 1, 0)), mode="edge")
    out = sum(xp[:, :, k:k + T] * kern[None, :, k:k + 1] for k in range(K))
    return jnp.abs(out)[:, None].astype(spectro_in.dtype)


if __name__ == "__main__":
    key = jax.random.PRNGKey(0)
    k_x1, k_x2, k_a = jax.random.split(key, 3)

    B, F = 2, 8
    a_vals = jax.random.uniform(k_a, (F,), minval=0.2, maxval=0.9,
                                dtype=jnp.float32)

    # Case 1: module default kernel_size=2, single lane-aligned time tile.
    T1 = 128
    x1 = jax.random.normal(k_x1, (B, 1, F, T1), dtype=jnp.float32)
    out1 = jax.block_until_ready(willmore_forward(x1, a_vals, kernel_size=2))
    ref1 = willmore_reference(x1, a_vals, kernel_size=2)
    assert out1.shape == (B, 1, F, T1)
    assert jnp.allclose(out1, ref1, atol=1e-5, rtol=1e-5)

    # Case 2: kernel_size=3 with a forced 128-wide time tile: exercises the
    # cross-tile replicate-boundary carry and the multi-shift path.
    T2 = 256
    x2 = jax.random.normal(k_x2, (B, 1, F, T2), dtype=jnp.float32)
    out2 = jax.block_until_ready(
        willmore_forward(x2, a_vals, kernel_size=3, time_tile=128))
    ref2 = willmore_reference(x2, a_vals, kernel_size=3)
    assert out2.shape == (B, 1, F, T2)
    assert jnp.allclose(out2, ref2, atol=1e-5, rtol=1e-5)

    print("KERNEL_OK")
</pallas_src>

<mosaic_0001>
module attributes {stable_mosaic.version = 11 : i64} {
  func.func @_willmore_kernel(%arg0: i32, %arg1: i32, %arg2: memref<1x1x8x128xf32, #tpu.memory_space<vmem>>, %arg3: memref<8x2xf32, #tpu.memory_space<vmem>>, %arg4: memref<1x1x8x128xf32, #tpu.memory_space<vmem>>, %arg5: memref<8x1xf32, #tpu.memory_space<vmem>>) attributes {dimension_semantics = [#tpu.dimension_semantics<parallel>, #tpu.dimension_semantics<arbitrary>], iteration_bounds = array<i64: 2, 1>, scalar_prefetch = 0 : i64, scratch_operands = 1 : i64, tpu.core_type = #tpu.core_type<tc>, window_params = [{transform_indices = @transform_0, window_bounds = array<i64: 1, 1, 8, 128>}, {pipeline_mode = #tpu.pipeline_mode<synchronous>, transform_indices = @transform_1, window_bounds = array<i64: 8, 2>}, {transform_indices = @transform_2, window_bounds = array<i64: 1, 1, 8, 128>}]} {
    %c0 = arith.constant 0 : index
    %c0_0 = arith.constant 0 : index
    %c0_1 = arith.constant 0 : index
    %c0_2 = arith.constant 0 : index
    %0 = vector.load %arg2[%c0, %c0_0, %c0_1, %c0_2] : memref<1x1x8x128xf32, #tpu.memory_space<vmem>>, vector<1x1x8x128xf32>
    %1 = vector.shape_cast %0 : vector<1x1x8x128xf32> to vector<8x128xf32>
    %c0_3 = arith.constant 0 : index
    %c0_4 = arith.constant 0 : index
    %2 = vector.load %arg3[%c0_3, %c0_4] : memref<8x2xf32, #tpu.memory_space<vmem>>, vector<8x2xf32>
    %c0_i32 = arith.constant 0 : i32
    %3 = arith.cmpi eq, %arg1, %c0_i32 : i32
    %4 = arith.extui %3 : i1 to i32
    %c0_i32_5 = arith.constant 0 : i32
    %5 = arith.cmpi ne, %4, %c0_i32_5 : i32
    scf.if %5 {
      %27 = vector.extract_strided_slice %1 {offsets = [0, 0], sizes = [8, 1], strides = [1, 1]} : vector<8x128xf32> to vector<8x1xf32>
      %c0_15 = arith.constant 0 : index
      %c0_16 = arith.constant 0 : index
      %28 = vector.load %arg5[%c0_15, %c0_16] : memref<8x1xf32, #tpu.memory_space<vmem>>, vector<8x1xf32>
      tpu.vector_store %arg5[%c0_15, %c0_16], %27 {strides = array<i32>} : memref<8x1xf32, #tpu.memory_space<vmem>>, vector<8x1xf32>,
    } else {
    }
    %c0_6 = arith.constant 0 : index
    %c0_7 = arith.constant 0 : index
    %6 = vector.load %arg5[%c0_6, %c0_7] : memref<8x1xf32, #tpu.memory_space<vmem>>, vector<8x1xf32>
    %7 = tpu.iota {dimensions = array<i32: 1>} : vector<8x128xi32>
    %8 = vector.extract_strided_slice %2 {offsets = [0, 0], sizes = [8, 1], strides = [1, 1]} : vector<8x2xf32> to vector<8x1xf32>
    %9 = vector.broadcast %8 : vector<8x1xf32> to vector<8x128xf32>
    %10 = arith.mulf %1, %9 : vector<8x128xf32>
    %c1_i32 = arith.constant 1 : i32
    %11 = tpu.dynamic_rotate %1 by %c1_i32 dim 1 : vector<8x128xf32>, i32 -> vector<8x128xf32>
    %c0_i32_8 = arith.constant 0 : i32
    %12 = vector.broadcast %c0_i32_8 : i32 to vector<8x128xi32>
    %13 = arith.cmpi eq, %7, %12 : vector<8x128xi32>
    %14 = vector.shape_cast %6 : vector<8x1xf32> to vector<8x1xf32>
    %15 = vector.broadcast %14 : vector<8x1xf32> to vector<8x128xf32>
    %16 = arith.select %13, %15, %11 : vector<8x128xi1>, vector<8x128xf32>
    %17 = vector.extract_strided_slice %2 {offsets = [0, 1], sizes = [8, 1], strides = [1, 1]} : vector<8x2xf32> to vector<8x1xf32>
    %18 = vector.broadcast %17 : vector<8x1xf32> to vector<8x128xf32>
    %19 = arith.mulf %16, %18 : vector<8x128xf32>
    %20 = arith.addf %10, %19 : vector<8x128xf32>
    %21 = math.absf %20 : vector<8x128xf32>
    %c0_9 = arith.constant 0 : index
    %c0_10 = arith.constant 0 : index
    %c0_11 = arith.constant 0 : index
    %c0_12 = arith.constant 0 : index
    %22 = vector.load %arg4[%c0_9, %c0_10, %c0_11, %c0_12] : memref<1x1x8x128xf32, #tpu.memory_space<vmem>>, vector<1x1x8x128xf32>
    %23 = vector.shape_cast %22 : vector<1x1x8x128xf32> to vector<8x128xf32>
    %24 = vector.shape_cast %21 : vector<8x128xf32> to vector<1x1x8x128xf32>
    tpu.vector_store %arg4[%c0_9, %c0_10, %c0_11, %c0_12], %24 {strides = array<i32>} : memref<1x1x8x128xf32, #tpu.memory_space<vmem>>, vector<1x1x8x128xf32>,
    %25 = vector.extract_strided_slice %11 {offsets = [0, 0], sizes = [8, 1], strides = [1, 1]} : vector<8x128xf32> to vector<8x1xf32>
    %c0_13 = arith.constant 0 : index
    %c0_14 = arith.constant 0 : index
    %26 = vector.load %arg5[%c0_13, %c0_14] : memref<8x1xf32, #tpu.memory_space<vmem>>, vector<8x1xf32>
    tpu.vector_store %arg5[%c0_13, %c0_14], %25 {strides = array<i32>} : memref<8x1xf32, #tpu.memory_space<vmem>>, vector<8x1xf32>,
    return
  }
  func.func @transform_0(%arg0: i32, %arg1: i32) -> (i32, i32, i32, i32) {
    %c0_i32 = arith.constant 0 : i32
    %c0_i32_0 = arith.constant 0 : i32
    %c0_i32_1 = arith.constant 0 : i32
    return %arg0, %c0_i32, %c0_i32_0, %arg1 : i32, i32, i32, i32
  }
  func.func @transform_1(%arg0: i32, %arg1: i32) -> (i32, i32) {
    %c0_i32 = arith.constant 0 : i32
    %c0_i32_0 = arith.constant 0 : i32
    %c0_i32_1 = arith.constant 0 : i32
    return %c0_i32, %c0_i32_0 : i32, i32
  }
  func.func @transform_2(%arg0: i32, %arg1: i32) -> (i32, i32, i32, i32) {
    %c0_i32 = arith.constant 0 : i32
    %c0_i32_0 = arith.constant 0 : i32
    %c0_i32_1 = arith.constant 0 : i32
    return %arg0, %c0_i32, %c0_i32_0, %arg1 : i32, i32, i32, i32
  }
}

</mosaic_0001>

<bundles_post_ra>
// kernel: tpu_custom_call.1
= control target key start
LH: loop header
LB: loop body
LE: loop exit
PB: predicated region body
PF: predicated region fallthrough
CT: control target
= control target key end

     0   :  { %7 = vsyncpa [#allocation4], 0  ;;  %s701_s0 = inlined_call_operand.hbm [shape: f32[2,1,8,128], index: 0, kind: input, shape index: {}]   ;;  %s702_s1 = inlined_call_operand.vmem [shape: f32[8,2], index: 1, kind: input, shape index: {}]   ;;  %s703_s2 = inlined_call_operand.hbm [shape: f32[2,1,8,128], index: 2, kind: output, shape index: {}]  }
   0x1   :  { %9 = vsyncpa [#allocation4 + $0x1], 0 }
   0x2   :  { %10 = vsyncpa [#allocation5], 0 }
   0x3   :  { %12 = vsyncpa [#allocation5 + $0x1], 0  ;;  %s522_s9 = smov 0   ;;  %s524_s10 = smov 0  }
   0x4   :  { %s526_s11 = smov 0   ;;  %s528_s12 = smov 0  }
   0x5   :  { %s530_s13 = smov 0   ;;  %s532_s14 = smov 0  }
   0x6 LB: > { %s307_s15 = sadd.s32 4294967295, %s500_s14   ;;  %s308_s16 = sadd.s32 4294967294, %s500_s14   ;;  %s500_s14 = sphi %s532_s14, %s18_s14   ;;  %s496_s13 = sphi %s530_s13, %s719_s13   ;;  %s492_s12 = sphi %s528_s12, %s718_s12   ;;  %s488_s11 = sphi %s526_s11, %s717_s11   ;;  %s484_s10 = sphi %s524_s10, %s716_s10   ;;  %s480_s9 = sphi %s522_s9, %s715_s9  }
   0x7   : > { %s30_s17 = sadd.s32 1, %s496_s13  ;;  %s39_s18 = sadd.s32 1, %s488_s11 }
   0x8   : > { %p32_p0 = scmp.ge.s32.totalorder %s30_s17, 2  ;;  %p46_p1 = scmp.ne.s32.totalorder %s488_s11, %s484_s10 }
   0x9   : > { %p47_p2 = scmp.eq.s32.totalorder %s500_s14, 0  ;;  %p52_p3 = scmp.ne.s32.totalorder %s484_s10, %s480_s9 }
   0xa   : > { %s721_s17 = smov (%p32_p0, %s30_s17), 0  ;;  %p53_p5 = scmp.eq.s32.totalorder %s307_s15, 0 }
   0xb   : > { %p563_p4 = por %p47_p2, %p46_p1  ;;  %s34_s20 = ssub.s32 %s496_s13, %s721_s17 }
   0xc   : > { %p99_p6 = scmp.eq.s32.totalorder %s307_s15, 1  ;;  %p37_p7 = scmp.eq.s32.totalorder %s34_s20, 0 }
   0xd   : > { %p569_p8 = por %p53_p5, %p52_p3  ;;  %p105_p10 = scmp.eq.s32.totalorder %s308_s16, 1 }
   0xe   : > { %p573_p9 = por %p99_p6, %p46_p1  ;;  %p332_p13 = scmp.lt.s32.totalorder %s500_s14, 2 }
   0xf   : > { %s578_s23 = scalar_select %p37_p7, %s488_s11, %s39_s18  }
  0x10   : > { %s707_s22 = scalar_select %p573_p9, 1, 0 }
  0x11   : > { %p580_p11 = por %p105_p10, %p52_p3  ;;  %s128_s25 = sand.u32 1, %s488_s11  }
  0x12   : > { %s311_s26 = sshll.u32 %s128_s25, 3  ;;  %s312_s27 = sshll.u32 %s496_s13, 7 }
  0x13   : > { %s708_s24 = scalar_select %p580_p11, 1, 0 }
  0x14   : > { %s591_s30 = scalar_lea.hbm %s701_s0, %s312_s27  ;;  %s132_s3 = scalar_lea.vmem [#allocation3], %s311_s26 }
  0x15   : > { %s140_s4 = sshll.u32 %s132_s3, 4  ;;  %p597_p0 = pnand %p332_p13, %p563_p4  ;;  %s593_s4 = int_to_ptr.vmem [resolvable:$true] %s140_s4 }
  0x16   : > { %s129_s6 = scalar_lea.sflag [#allocation4], %s128_s25  ;;  %s388_s7 = scalar_lea.hbm %s591_s30, 128 }
  0x17   : > { %p389_p3 = scmp.ne.s32.totalorder %s591_s30, %s388_s7  ;;  %p390_p5 = pneg %p597_p0 }
  0x18   : > { %s393_s16 = scalar_lea.hbm %s701_s0, 256  ;;  %p394_p4 = scmp.lt.u32.totalorder %s591_s30, %s701_s0 }
  0x19   : > { %p391_p6 = pnand %p390_p5, %p389_p3  ;;  %p395_p10 = scmp.lt.u32.totalorder %s393_s16, %s388_s7 }
  0x1a   : > { %p397_p12 = scmp.lt.u32.totalorder %s388_s7, %s591_s30 }
  0x1b   : > { %p392_p7 = pneg %p391_p6  ;;  %p396_p13 = por %p395_p10, %p394_p4 }
  0x1d   : > { %p398_p1 = por %p397_p12, %p396_p13 }
  0x1f   : > { %p399_p2 = pnand %p398_p1, %p392_p7 }
  0x21   : > { %402 = shalt.err (!%p399_p2)
}
  0x22   : > { %s403_s20 = scalar_lea.vmem %s593_s4, 128  ;;  %s502_s25 = smov [#allocation3]  }
  0x23   : > { %p404_p3 = scmp.ne.s32.totalorder %s593_s4, %s403_s20  ;;  %s408_s26 = sshll.u32 %s502_s25, 4  ;;  %s409_s26 = int_to_ptr.vmem [resolvable:$false] %s408_s26 }
  0x24   : > { %s410_s27 = scalar_lea.vmem %s409_s26, 256  ;;  %p411_p9 = scmp.lt.s32.totalorder %s593_s4, %s409_s26 }
  0x25   : > { %p406_p6 = pnand %p404_p3, %p390_p5  ;;  %p412_p4 = scmp.lt.s32.totalorder %s410_s27, %s403_s20 }
  0x27   : > { %p407_p11 = pneg %p406_p6  ;;  %p413_p10 = por %p412_p4, %p411_p9 }
  0x29   : > { %p414_p12 = pnand %p413_p10, %p407_p11 }
  0x2b   : > { %417 = shalt.err (!%p414_p12)
}
  0x2c   : > { %327 = dma.hbm_to_vmem [thread:$0]  (!%p597_p0), %s591_s30, 128, %s593_s4, %s129_s6  }
  0x2d   : > { %p710_p1 = scmp.lt.s32.totalorder %s500_s14, 3  ;;  %p711_p2 = scmp.ge.s32.totalorder %s500_s14, 1 }
  0x2f   : > { %p146_p5 = pnand %p711_p2, %p710_p1 }
  0x30   : > { %s633_s28 = sand.u32 (!%p146_p5), 1, %s484_s10  }
  0x31   : > { %149 = sbr.rel (%p146_p5) target bundleno = 218 (0xda), region = 28  ;;  %s314_s29 = sshll.u32 (!%p146_p5), %s633_s28, 3 }
  0x32   : > { %s152_s3 = scalar_lea.sflag (!%p146_p5), [#allocation4], %s633_s28  ;;  %s155_s5 = scalar_lea.vmem (!%p146_p5), [#allocation3], %s314_s29 }
  0x38   : > { %471 = dma.done.wait (%p569_p8), %s152_s3, 128  }
  0x39   : > { %473 = vsyncadd (%p569_p8), %s152_s3, 4294967168  ;;  %v503_v0 = vmov 1   ;;  %v504_v1 = vmov 0   ;;  %vm182_vm0 = vcmask 7168   ;;  %v176_v2 = vld [vmem:[%s155_s5] sm:$0xff]  ;;  %v177_v3 = vld [vmem:[%s702_s1] sm:$0xff]  ;;  %v185_v5 = vlaneseq }
  0x3a   : > { %386 = vset.pattern.permute.xlu1 %v503_v0  ;;  %385 = vset.pattern.permute.xlu0 %v504_v1  ;;  %183 = vst.msk [vmem:[#allocation2] sm:$0xff] %vm182_vm0, %v176_v2  ;;  %s505_s6 = smov 1   ;;  %s317_s21 = sshll.u32 %s492_s12, 7 }
  0x3b   : > { %203 = vperm.xlu1 %386, %v177_v3   ;;  %v186_v7 = vand.u32 127, %v185_v5  ;;  %s175_s7 = scalar_lea.vmem [#allocation6], %s314_s29  ;;  %s652_s18 = scalar_lea.hbm %s703_s2, %s317_s21 }
  0x3c   : > { %s227_s8 = sshll.u32 %s175_s7, 4  ;;  %s213_s19 = scalar_lea.sflag [#allocation5], %s633_s28  ;;  %s654_s8 = int_to_ptr.vmem [resolvable:$true] %s227_s8 }
  0x3d   : > { %vm195_vm1 = vcmp.eq.s32.totalorder %v186_v7, 0  ;;  %s418_s20 = scalar_lea.vmem %s654_s8, 128  ;;  %p712_p9 = scmp.ne.s32.totalorder %s707_s22, 0 }
  0x3e   : > { %p419_p8 = scmp.ne.s32.totalorder %s654_s8, %s418_s20  ;;  %s506_s12 = smov [#allocation6]  }
  0x3f   : > { %193 = vrot.lane.b32.xlu1 %v176_v2, %s505_s6  ;;  %s422_s25 = sshll.u32 %s506_s12, 4  ;;  %s423_s25 = int_to_ptr.vmem [resolvable:$false] %s422_s25 }
  0x40   : > { %p420_p11 = pnand %p419_p8, %p712_p9  ;;  %s424_s26 = scalar_lea.vmem %s423_s25, 256 }
  0x41   : > { %v184_v4 = vld [vmem:[#allocation2] sm:$0xff]  ;;  %p425_p7 = scmp.lt.s32.totalorder %s654_s8, %s423_s25  ;;  %p426_p13 = scmp.lt.s32.totalorder %s424_s26, %s418_s20 }
  0x42   : > { %198 = vperm.xlu0 %385, %v184_v4   ;;  %p421_p0 = pneg %p420_p11 }
  0x43   : > { %p427_p3 = por %p426_p13, %p425_p7 }
  0x45   : > { %p428_p6 = pnand %p427_p3, %p421_p0 }
  0x46   : > { %189 = vperm.xlu0 %385, %v177_v3  }
  0x4a   : > { %387 = vset.pattern.permute.xlu0 %v503_v0 }
  0xba   : > { %v204_v6 = vpop.permute.xlu1 %203 }
  0xbe   : > { %v194_v8 = vpop.permute.xlu1 %193 }
  0xbf   : > { %211 = vst.msk [vmem:[#allocation2] sm:$0xff] %vm182_vm0, %v194_v8 }
  0xc1   : > { %v199_v9 = vpop.permute.xlu0 %198 }
  0xc2   : > { %v201_v10 = vsel %vm195_vm1, %v199_v9, %v194_v8 }
  0xc3   : > { %v206_v12 = vmul.f32 %v204_v6, %v201_v10 }
  0xc5   : > { %v190_v11 = vpop.permute.xlu0 %189 }
  0xc6   : > { %v192_v13 = vmul.f32 %v190_v11, %v176_v2 }
  0xc8   : > { %v207_v14 = vadd.f32 %v206_v12, %v192_v13 }
  0xca   : > { %v208_v15 = vand.u32 2147483647, %v207_v14 }
  0xcc   : > { %209 = vst [vmem:[%s175_s7] sm:$0xff] %v208_v15 }
  0xcd   : > { %431 = shalt.err (!%p428_p6)
}
  0xce   : > { %s432_s27 = scalar_lea.hbm %s652_s18, 128  ;;  %s436_s3 = scalar_lea.hbm %s703_s2, 256 }
  0xcf   : > { %p433_p4 = scmp.ne.s32.totalorder %s652_s18, %s432_s27  ;;  %p437_p1 = scmp.lt.u32.totalorder %s652_s18, %s703_s2 }
  0xd0   : > { %p438_p2 = scmp.lt.u32.totalorder %s436_s3, %s432_s27  ;;  %p440_p8 = scmp.lt.u32.totalorder %s432_s27, %s652_s18 }
  0xd1   : > { %p434_p10 = pnand %p433_p4, %p712_p9 }
  0xd2   : > { %p439_p5 = por %p438_p2, %p437_p1 }
  0xd3   : > { %p435_p12 = pneg %p434_p10 }
  0xd4   : > { %p441_p11 = por %p440_p8, %p439_p5 }
  0xd6   : > { %p442_p0 = pnand %p441_p11, %p435_p12 }
  0xd8   : > { %445 = shalt.err (!%p442_p0)
}
  0xd9   : > { %322 = dma.vmem_to_hbm [thread:$0]  (%p712_p9), %s654_s8, 128, %s652_s18, %s213_s19  }
  0xda PF: > { %s239_s4 = sand.u32 1, %s480_s9   ;;  %p713_p7 = scmp.ne.s32.totalorder %s708_s24, 0 }
  0xdb   : > { %p714_p13 = scmp.ge.s32.totalorder %s500_s14, 2  ;;  %s240_s6 = scalar_lea.sflag [#allocation5], %s239_s4 }
  0xdd   : > { %p329_p3 = pnand %p714_p13, %p713_p7 }
  0xdf   : > { %475 = dma.done.wait (!%p329_p3), %s240_s6, 128  }
  0xe0   : > { %477 = vsyncadd (!%p329_p3), %s240_s6, 4294967168  ;;  %s18_s14 = sadd.s32 1, %s500_s14   ;;  %s715_s9 = smov %s484_s10 }
  0xe1   : > { %p15_p6 = scmp.ge.s32.totalorder %s18_s14, 4   ;;  %s716_s10 = smov %s488_s11 }
  0xe2   : > { %s717_s11 = smov %s578_s23  ;;  %s718_s12 = smov %s496_s13 }
  0xe3   : > { %s719_s13 = smov %s721_s17  ;;  %17 = sbr.rel (!%p15_p6) target bundleno = 6 (0x6), region = 77 }
  0xea   :  { %245 = vsyncpa [#allocation4], 1 }
  0xeb   :  { %247 = vsyncpa [#allocation4 + $0x1], 1 }
  0xec   :  { %248 = vsyncpa [#allocation5], 1 }
  0xed   :  { %250 = vsyncpa [#allocation5 + $0x1], 1 }

</bundles_post_ra>
